<compile_context>
chip_gen: v6e
topology: v6e:2x2x1
jax: 0.10.0
libtpu: 0.0.40
codegen_flags: <defaults>
</compile_context>

<pallas_src>
import jax
import jax.numpy as jnp
from jax.experimental import pallas as pl
from jax.experimental.pallas import tpu as pltpu

_PAD = 128            # lane width; the folded-bias activation is this wide
_BIAS_COL = _PAD - 1  # activation column carrying the constant 1 (folded bias)


def _round_up(n: int, m: int) -> int:
    return ((n + m - 1) // m) * m


# ----------------------------------------------------------------------------
# Parameter packing (host side, run ONCE per parameter update)
# ----------------------------------------------------------------------------
def pack_wassgan_params(weights, biases, compute_dtype=jnp.bfloat16):
    """Pack [W_i (in,out), b_i (out,)] into one (L, _PAD, _PAD) folded-bias buffer.

    Per layer i:
      rows [0, fan_in), cols [0, fan_out) : W_i
      row _BIAS_COL,    cols [0, fan_out) : b_i
      [_BIAS_COL, _BIAS_COL] = 1          : lets the constant-1 bias column
                                            self-propagate through matmul+relu.
    Requires fan_in, fan_out < _PAD (true for this model: <= 32).
    """
    n_layers = len(weights)
    buf = jnp.zeros((n_layers, _PAD, _PAD), jnp.float32)
    for i, (w, b) in enumerate(zip(weights, biases)):
        fan_in, fan_out = w.shape
        assert fan_in < _PAD and fan_out < _PAD
        buf = buf.at[i, :fan_in, :fan_out].set(w)
        buf = buf.at[i, _BIAS_COL, :fan_out].set(b)
        buf = buf.at[i, _BIAS_COL, _BIAS_COL].set(1.0)
    return buf.astype(compute_dtype)


# ----------------------------------------------------------------------------
# In-kernel MLP
# ----------------------------------------------------------------------------
def _run_mlp(h, p_ref, n_layers, inner_act, final_sigmoid, bias_col):
    """Runs L folded-bias layers on a (tile_b, _PAD) f32 activation."""
    compute_dtype = p_ref.dtype
    for i in range(n_layers):
        lhs = h if h.dtype == compute_dtype else h.astype(compute_dtype)
        h = jnp.dot(lhs, p_ref[i], preferred_element_type=jnp.float32)
        if i != n_layers - 1:
            if inner_act == "relu":
                # bias column self-propagates: W[127,127]=1, relu(1)=1 -> no restore.
                h = jnp.maximum(h, 0.0)
            else:
                h = jax.nn.sigmoid(h)
                h = jnp.where(bias_col, 1.0, h)  # restore folded-bias column
            # torch.nn.Dropout: identity in eval mode.
    if final_sigmoid:
        h = jax.nn.sigmoid(h)
    return h


def _make_mlp_kernel(n_layers, n_in, final_sigmoid, inner_act):
    def kernel(x_ref, p_ref, o_ref, act_ref):
        tile_b = act_ref.shape[0]
        col = jax.lax.broadcasted_iota(jnp.int32, (tile_b, _PAD), 1)
        bias_col = col == _BIAS_COL
        # Build the padded activation in VMEM: zeros, x in cols [0, n_in), 1 @ bias col.
        act_ref[...] = jnp.where(bias_col, 1.0, 0.0)
        act_ref[:, :n_in] = x_ref[...]
        h = _run_mlp(act_ref[...], p_ref, n_layers, inner_act, final_sigmoid, bias_col)
        o_ref[...] = h.astype(o_ref.dtype)
    return kernel


def _make_gen_disc_kernel(n_gen, n_disc, n_gen_in, n_inputs, inner_act):
    """Fused generator -> critic forward (single launch, activations stay in VMEM)."""
    def kernel(zx_ref, gp_ref, dp_ref, o_ref, act_ref):
        tile_b = act_ref.shape[0]
        col = jax.lax.broadcasted_iota(jnp.int32, (tile_b, _PAD), 1)
        bias_col = col == _BIAS_COL

        # Generator input: zx cols [0, n_gen_in); bias column = 1.
        act_ref[...] = jnp.where(bias_col, 1.0, 0.0)
        act_ref[:, :n_gen_in] = zx_ref[:, :n_gen_in]
        g = _run_mlp(act_ref[...], gp_ref, n_gen, inner_act, True, bias_col)

        # Critic input = [gen_out (n_inputs cols), extra @ col n_inputs, 1 @ bias col].
        # TODO(synk): assumes the critic feature layout is concat([gen(z), extra], 1);
        #             adjust if the training loop concatenates in a different order.
        extra = zx_ref[:, n_gen_in:n_gen_in + 1]               # (tile_b, 1)
        d_in = jnp.where(col == n_inputs, extra, g)
        d_in = jnp.where(bias_col, 1.0, d_in)
        d = _run_mlp(d_in, dp_ref, n_disc, inner_act, False, bias_col)

        # Single lane-dense output slab: gen in cols [0, n_inputs), critic @ col n_inputs.
        o_ref[...] = jnp.where(col == n_inputs, d[:, 0:1], g).astype(o_ref.dtype)
    return kernel


# ----------------------------------------------------------------------------
# Wrappers
# ----------------------------------------------------------------------------
def _choose_tile_b(batch, tile_b):
    """Sublane-multiple tile; >= 2 grid steps when the batch allows (v7x 2 TCs),
    and roughly batch/2 sized tiles so the batch is never over-padded."""
    tile_b = _round_up(max(int(tile_b), 8), 8)
    two_step = _round_up(pl.cdiv(batch, 2), 8)
    return max(8, min(tile_b, two_step))


def wassgan_forward(x, packed_params, *, is_gen, out_dim, inner_act="relu", tile_b=1024):
    """WassGan MLP forward in eval mode.

    x:             (batch, n_inputs + 1) f32
    packed_params: (L, 128, 128) buffer from pack_wassgan_params (dtype = compute dtype)
    Returns (batch, out_dim) in packed_params.dtype.
    """
    batch, n_in = x.shape
    n_layers = packed_params.shape[0]
    tb = _choose_tile_b(batch, tile_b)
    kernel = _make_mlp_kernel(n_layers, n_in, is_gen, inner_act)
    out = pl.pallas_call(
        kernel,
        out_shape=jax.ShapeDtypeStruct((batch, _PAD), packed_params.dtype),
        grid=(pl.cdiv(batch, tb),),
        in_specs=[
            pl.BlockSpec((tb, n_in), lambda i: (i, 0)),                  # narrow x stream
            pl.BlockSpec((n_layers, _PAD, _PAD), lambda i: (0, 0, 0)),   # resident params
        ],
        out_specs=pl.BlockSpec((tb, _PAD), lambda i: (i, 0)),
        scratch_shapes=[pltpu.VMEM((tb, _PAD), jnp.float32)],            # padded-activation staging
        compiler_params=pltpu.CompilerParams(dimension_semantics=("parallel",)),
    )(x, packed_params)
    return out[:, :out_dim]


def wassgan_gen_disc_forward(z, extra, gen_params, disc_params, *,
                             n_inputs, inner_act="relu", tile_b=1024):
    """Fused critic(concat([gen(z), extra])) in a single pallas_call.

    z:     (batch, n_inputs + 1) generator input
    extra: (batch, 1) extra critic feature appended to the generated sample
    Returns (gen_out (batch, n_inputs), disc_out (batch, 1)).
    """
    assert gen_params.dtype == disc_params.dtype
    batch, n_gen_in = z.shape
    n_gen, n_disc = gen_params.shape[0], disc_params.shape[0]

    # Fold `extra` into the streamed z buffer -> one (batch, n_gen_in + 1) input.
    zx = jnp.concatenate([z, jnp.reshape(extra, (batch, 1)).astype(z.dtype)], axis=1)

    tb = _choose_tile_b(batch, tile_b)
    kernel = _make_gen_disc_kernel(n_gen, n_disc, n_gen_in, n_inputs, inner_act)
    slab = pl.pallas_call(
        kernel,
        out_shape=jax.ShapeDtypeStruct((batch, _PAD), gen_params.dtype),
        grid=(pl.cdiv(batch, tb),),
        in_specs=[
            pl.BlockSpec((tb, n_gen_in + 1), lambda i: (i, 0)),          # z + extra stream
            pl.BlockSpec((n_gen, _PAD, _PAD), lambda i: (0, 0, 0)),      # gen params (resident)
            pl.BlockSpec((n_disc, _PAD, _PAD), lambda i: (0, 0, 0)),     # disc params (resident)
        ],
        out_specs=pl.BlockSpec((tb, _PAD), lambda i: (i, 0)),
        scratch_shapes=[pltpu.VMEM((tb, _PAD), jnp.float32)],
        compiler_params=pltpu.CompilerParams(dimension_semantics=("parallel",)),
    )(zx, gen_params, disc_params)
    return slab[:, :n_inputs], slab[:, n_inputs:n_inputs + 1]


# ----------------------------------------------------------------------------
# Reference + test harness
# ----------------------------------------------------------------------------
def _init_params(key, dims):
    """torch.nn.Linear-like init: W, b ~ U(-k, k), k = 1/sqrt(fan_in)."""
    weights, biases = [], []
    for i in range(len(dims) - 1):
        fan_in, fan_out = dims[i], dims[i + 1]
        k = 1.0 / jnp.sqrt(jnp.float32(fan_in))
        key, kw, kb = jax.random.split(key, 3)
        weights.append(jax.random.uniform(kw, (fan_in, fan_out), jnp.float32, -k, k))
        biases.append(jax.random.uniform(kb, (fan_out,), jnp.float32, -k, k))
    return weights, biases


def _reference_forward(x, weights, biases, *, is_gen, inner_act):
    h = x
    n = len(weights)
    for i, (w, b) in enumerate(zip(weights, biases)):
        h = h @ w + b
        if i != n - 1:
            h = jnp.maximum(h, 0.0) if inner_act == "relu" else jax.nn.sigmoid(h)
    return jax.nn.sigmoid(h) if is_gen else h


if __name__ == "__main__":
    # Config consistent with the module: n_inputs=16, layer_nodes=[32, 32]
    #   generator dims:     [17, 32, 32, 16], relu inner act, sigmoid out
    #   discriminator dims: [17, 32, 32, 1],  relu inner act, identity out
    n_inputs = 16
    layer_nodes = [32, 32]

    root = jax.random.PRNGKey(0)
    kx, ke, kg, kd, kx2, ke2 = jax.random.split(root, 6)

    batch = 8
    x = jax.random.normal(kx, (batch, n_inputs + 1), jnp.float32)
    extra = jax.random.normal(ke, (batch, 1), jnp.float32)

    gen_dims = [n_inputs + 1] + layer_nodes + [n_inputs]
    disc_dims = [n_inputs + 1] + layer_nodes + [1]
    gen_w, gen_b = _init_params(kg, gen_dims)
    disc_w, disc_b = _init_params(kd, disc_dims)

    # Pack once per parameter update (hoisted out of the forward path).
    gen_p32 = pack_wassgan_params(gen_w, gen_b, jnp.float32)
    disc_p32 = pack_wassgan_params(disc_w, disc_b, jnp.float32)
    gen_pbf = pack_wassgan_params(gen_w, gen_b)    # default bf16 fast path
    disc_pbf = pack_wassgan_params(disc_w, disc_b)

    # --- f32 path (exact vs. reference) --------------------------------------
    y_gen = jax.block_until_ready(wassgan_forward(x, gen_p32, is_gen=True, out_dim=n_inputs))
    y_disc = jax.block_until_ready(wassgan_forward(x, disc_p32, is_gen=False, out_dim=1))
    ref_gen = _reference_forward(x, gen_w, gen_b, is_gen=True, inner_act="relu")
    ref_disc = _reference_forward(x, disc_w, disc_b, is_gen=False, inner_act="relu")
    assert y_gen.shape == (batch, n_inputs) and y_disc.shape == (batch, 1)
    assert jnp.allclose(y_gen, ref_gen, atol=1e-5, rtol=1e-5)
    assert jnp.allclose(y_disc, ref_disc, atol=1e-5, rtol=1e-5)

    # --- fused gen -> critic, multi-step grid + partial final block ----------
    batch2 = 37   # exercises grid=(2,), non-multiple-of-8 batch, partial last block
    x2 = jax.random.normal(kx2, (batch2, n_inputs + 1), jnp.float32)
    e2 = jax.random.normal(ke2, (batch2, 1), jnp.float32)
    g_out, d_out = wassgan_gen_disc_forward(x2, e2, gen_p32, disc_p32, n_inputs=n_inputs)
    g_out, d_out = jax.block_until_ready((g_out, d_out))
    ref_g2 = _reference_forward(x2, gen_w, gen_b, is_gen=True, inner_act="relu")
    ref_d2 = _reference_forward(jnp.concatenate([ref_g2, e2], axis=1),
                                disc_w, disc_b, is_gen=False, inner_act="relu")
    assert g_out.shape == (batch2, n_inputs) and d_out.shape == (batch2, 1)
    assert jnp.allclose(g_out, ref_g2, atol=1e-5, rtol=1e-5)
    assert jnp.allclose(d_out, ref_d2, atol=1e-5, rtol=1e-5)

    # --- default bf16 streaming fast path (f32 MXU accumulation) -------------
    y_gen_bf = jax.block_until_ready(wassgan_forward(x, gen_pbf, is_gen=True, out_dim=n_inputs))
    y_disc_bf = jax.block_until_ready(wassgan_forward(x, disc_pbf, is_gen=False, out_dim=1))
    assert jnp.allclose(y_gen_bf.astype(jnp.float32), ref_gen, atol=5e-2, rtol=5e-2)
    assert jnp.allclose(y_disc_bf.astype(jnp.float32), ref_disc, atol=5e-2, rtol=5e-2)

    g_bf, d_bf = wassgan_gen_disc_forward(x2, e2, gen_pbf, disc_pbf, n_inputs=n_inputs)
    g_bf, d_bf = jax.block_until_ready((g_bf, d_bf))
    assert jnp.allclose(g_bf.astype(jnp.float32), ref_g2, atol=1e-1, rtol=1e-1)
    assert jnp.allclose(d_bf.astype(jnp.float32), ref_d2, atol=1e-1, rtol=1e-1)

    print("KERNEL_OK")
</pallas_src>

<mosaic_0001>
module attributes {stable_mosaic.version = 11 : i64} {
  func.func @kernel(%arg0: i32, %arg1: memref<8x17xf32, #tpu.memory_space<vmem>>, %arg2: memref<3x128x128xf32, #tpu.memory_space<vmem>>, %arg3: memref<8x128xf32, #tpu.memory_space<vmem>>, %arg4: memref<8x128xf32, #tpu.memory_space<vmem>>) attributes {dimension_semantics = [#tpu.dimension_semantics<parallel>], iteration_bounds = array<i64: 1>, scalar_prefetch = 0 : i64, scratch_operands = 1 : i64, tpu.core_type = #tpu.core_type<tc>, window_params = [{transform_indices = @transform_0, window_bounds = array<i64: 8, 17>}, {pipeline_mode = #tpu.pipeline_mode<synchronous>, transform_indices = @transform_1, window_bounds = array<i64: 3, 128, 128>}, {transform_indices = @transform_2, window_bounds = array<i64: 8, 128>}]} {
    %0 = tpu.iota {dimensions = array<i32: 1>} : vector<8x128xi32>
    %c127_i32 = arith.constant 127 : i32
    %1 = vector.broadcast %c127_i32 : i32 to vector<8x128xi32>
    %2 = arith.cmpi eq, %0, %1 : vector<8x128xi32>
    %cst = arith.constant 1.000000e+00 : f32
    %cst_0 = arith.constant 0.000000e+00 : f32
    %3 = vector.broadcast %cst : f32 to vector<8x128xf32>
    %4 = vector.broadcast %cst_0 : f32 to vector<8x128xf32>
    %5 = arith.select %2, %3, %4 : vector<8x128xi1>, vector<8x128xf32>
    %c0 = arith.constant 0 : index
    %c0_1 = arith.constant 0 : index
    %6 = vector.load %arg4[%c0, %c0_1] : memref<8x128xf32, #tpu.memory_space<vmem>>, vector<8x128xf32>
    tpu.vector_store %arg4[%c0, %c0_1], %5 {strides = array<i32>} : memref<8x128xf32, #tpu.memory_space<vmem>>, vector<8x128xf32>,
    %c0_2 = arith.constant 0 : index
    %c0_3 = arith.constant 0 : index
    %7 = vector.load %arg1[%c0_2, %c0_3] : memref<8x17xf32, #tpu.memory_space<vmem>>, vector<8x17xf32>
    %c0_4 = arith.constant 0 : index
    %c0_5 = arith.constant 0 : index
    %8 = vector.load %arg4[%c0_4, %c0_5] : memref<8x128xf32, #tpu.memory_space<vmem>>, vector<8x17xf32>
    tpu.vector_store %arg4[%c0_4, %c0_5], %7 {strides = array<i32>} : memref<8x128xf32, #tpu.memory_space<vmem>>, vector<8x17xf32>,
    %c0_6 = arith.constant 0 : index
    %c0_7 = arith.constant 0 : index
    %9 = vector.load %arg4[%c0_6, %c0_7] : memref<8x128xf32, #tpu.memory_space<vmem>>, vector<8x128xf32>
    %c0_8 = arith.constant 0 : index
    %c0_9 = arith.constant 0 : index
    %c0_10 = arith.constant 0 : index
    %10 = vector.load %arg2[%c0_8, %c0_9, %c0_10] : memref<3x128x128xf32, #tpu.memory_space<vmem>>, vector<1x128x128xf32>
    %11 = vector.shape_cast %10 : vector<1x128x128xf32> to vector<128x128xf32>
    %cst_11 = arith.constant dense<0.000000e+00> : vector<8x128xf32>
    %12 = tpu.matmul %9, %11, %cst_11 {dimension_numbers = #tpu.dot_dimension_numbers<[1], [0], [0], [1], [0, 0, 1, 1], [], []>} : vector<8x128xf32>, vector<128x128xf32>, vector<8x128xf32> -> vector<8x128xf32>
    %cst_12 = arith.constant 0.000000e+00 : f32
    %13 = vector.broadcast %cst_12 : f32 to vector<8x128xf32>
    %14 = arith.maximumf %12, %13 : vector<8x128xf32>
    %c1 = arith.constant 1 : index
    %c0_13 = arith.constant 0 : index
    %c0_14 = arith.constant 0 : index
    %15 = vector.load %arg2[%c1, %c0_13, %c0_14] : memref<3x128x128xf32, #tpu.memory_space<vmem>>, vector<1x128x128xf32>
    %16 = vector.shape_cast %15 : vector<1x128x128xf32> to vector<128x128xf32>
    %cst_15 = arith.constant dense<0.000000e+00> : vector<8x128xf32>
    %17 = tpu.matmul %14, %16, %cst_15 {dimension_numbers = #tpu.dot_dimension_numbers<[1], [0], [0], [1], [0, 0, 1, 1], [], []>} : vector<8x128xf32>, vector<128x128xf32>, vector<8x128xf32> -> vector<8x128xf32>
    %cst_16 = arith.constant 0.000000e+00 : f32
    %18 = vector.broadcast %cst_16 : f32 to vector<8x128xf32>
    %19 = arith.maximumf %17, %18 : vector<8x128xf32>
    %c2 = arith.constant 2 : index
    %c0_17 = arith.constant 0 : index
    %c0_18 = arith.constant 0 : index
    %20 = vector.load %arg2[%c2, %c0_17, %c0_18] : memref<3x128x128xf32, #tpu.memory_space<vmem>>, vector<1x128x128xf32>
    %21 = vector.shape_cast %20 : vector<1x128x128xf32> to vector<128x128xf32>
    %cst_19 = arith.constant dense<0.000000e+00> : vector<8x128xf32>
    %22 = tpu.matmul %19, %21, %cst_19 {dimension_numbers = #tpu.dot_dimension_numbers<[1], [0], [0], [1], [0, 0, 1, 1], [], []>} : vector<8x128xf32>, vector<128x128xf32>, vector<8x128xf32> -> vector<8x128xf32>
    %23 = arith.negf %22 : vector<8x128xf32>
    %24 = math.exp %23 : vector<8x128xf32>
    %cst_20 = arith.constant 1.000000e+00 : f32
    %25 = vector.broadcast %cst_20 : f32 to vector<8x128xf32>
    %26 = arith.addf %25, %24 : vector<8x128xf32>
    %27 = arith.divf %25, %26 : vector<8x128xf32>
    %c0_21 = arith.constant 0 : index
    %c0_22 = arith.constant 0 : index
    %28 = vector.load %arg3[%c0_21, %c0_22] : memref<8x128xf32, #tpu.memory_space<vmem>>, vector<8x128xf32>
    tpu.vector_store %arg3[%c0_21, %c0_22], %27 {strides = array<i32>} : memref<8x128xf32, #tpu.memory_space<vmem>>, vector<8x128xf32>,
    return
  }
  func.func @transform_0(%arg0: i32) -> (i32, i32) {
    %c0_i32 = arith.constant 0 : i32
    %c0_i32_0 = arith.constant 0 : i32
    return %arg0, %c0_i32 : i32, i32
  }
  func.func @transform_1(%arg0: i32) -> (i32, i32, i32) {
    %c0_i32 = arith.constant 0 : i32
    %c0_i32_0 = arith.constant 0 : i32
    %c0_i32_1 = arith.constant 0 : i32
    %c0_i32_2 = arith.constant 0 : i32
    return %c0_i32, %c0_i32_0, %c0_i32_1 : i32, i32, i32
  }
  func.func @transform_2(%arg0: i32) -> (i32, i32) {
    %c0_i32 = arith.constant 0 : i32
    %c0_i32_0 = arith.constant 0 : i32
    return %arg0, %c0_i32 : i32, i32
  }
}

</mosaic_0001>

<bundles_post_ra>
// kernel: tpu_custom_call.1
= control target key start
LH: loop header
LB: loop body
LE: loop exit
PB: predicated region body
PF: predicated region fallthrough
CT: control target
= control target key end

     0   :  { %7 = vsyncpa [#allocation4], 0  ;;  %s652_s0 = inlined_call_operand.hbm [shape: f32[8,17], index: 0, kind: input, shape index: {}]   ;;  %s653_s1 = inlined_call_operand.hbm [shape: f32[3,128,128], index: 1, kind: input, shape index: {}]   ;;  %s654_s2 = inlined_call_operand.hbm [shape: f32[8,128], index: 2, kind: output, shape index: {}]  }
   0x1   :  { %8 = vsyncpa [#allocation7], 0 }
   0x2   :  { %9 = vsyncpa [#allocation5], 0  ;;  %s566_s9 = smov [#allocation3]   ;;  %s567_s11 = smov [#allocation6]  }
   0x3   :  { %s16_s10 = sshll.u32 %s566_s9, 4  ;;  %s25_s12 = sshll.u32 %s567_s11, 4  ;;  %s17_s10 = int_to_ptr.vmem [resolvable:$true] %s16_s10  ;;  %s26_s12 = int_to_ptr.vmem [resolvable:$true] %s25_s12 }
   0x4   :  { %s508_s13 = scalar_lea.vmem %s17_s10, 128  ;;  %p513_p1 = scmp.lt.s32.totalorder %s17_s10, %s17_s10 }
   0x5   :  { %p509_p0 = scmp.ne.s32.totalorder %s17_s10, %s508_s13  ;;  %p514_p2 = scmp.lt.s32.totalorder %s508_s13, %s508_s13 }
   0x7   :  { %p515_p3 = por %p514_p2, %p513_p1 }
   0x9   :  { %p516_p4 = pnand %p515_p3, %p509_p0 }
   0xb   :  { %519 = shalt.err (!%p516_p4)
}
   0xc   :  { %19 = dma.hbm_to_vmem [thread:$0]  %s652_s0, 128, %s17_s10, [#allocation4]  }
   0xd   :  { %s528_s16 = scalar_lea.vmem %s26_s12, 6144  ;;  %p533_p6 = scmp.lt.s32.totalorder %s26_s12, %s26_s12 }
   0xe   :  { %p529_p5 = scmp.ne.s32.totalorder %s26_s12, %s528_s16  ;;  %p534_p7 = scmp.lt.s32.totalorder %s528_s16, %s528_s16 }
  0x10   :  { %p535_p8 = por %p534_p7, %p533_p6 }
  0x12   :  { %p536_p9 = pnand %p535_p8, %p529_p5 }
  0x14   :  { %539 = shalt.err (!%p536_p9)
}
  0x15   :  { %s568_s17 = smov 128   ;;  %s569_s18 = smov 8  }
  0x16   :  { %31 = dma.hbm_to_vmem [thread:$0]  %s653_s1, 6144, %s26_s12, [#allocation7], %s568_s17, %s568_s17, %s569_s18  }
  0x17   :  { %560 = dma.done.wait [#allocation4], 128  }
  0x18   :  { %561 = vsyncadd [#allocation4], 4294967168 }
  0x19   :  { %562 = dma.done.wait [#allocation7], 6144  }
  0x1a   :  { %563 = vsyncadd [#allocation7], 4294961152  ;;  %v38_v0 = vlaneseq  ;;  %v570_v1 = vmov 0.0   ;;  %vm571_vm0 = vmmov 0   ;;  %v62_v4 = vld [vmem:[#allocation6 + $0x78] sm:$0xff]  ;;  %v61_v5 = vld [vmem:[#allocation6 + $0x70] sm:$0xff] }
  0x1b   :  { %384 = vmatprep.subr.mxu0 %v570_v1  ;;  %416 = vmatprep.mubr.msk.f32.mxu0 %vm571_vm0, %v570_v1  ;;  %v60_v6 = vld [vmem:[#allocation6 + $0x68] sm:$0xff]  ;;  %vm44_vm2 = vcmask 138240   ;;  %v59_v7 = vld [vmem:[#allocation6 + $0x60] sm:$0xff]  ;;  %v43_v8 = vld [vmem:[#allocation3] sm:$0xff]  ;;  %s572_s0 = smov [#allocation8]  }
  0x1c   :  { %v39_v2 = vand.u32 127, %v38_v0  ;;  %419 = vmatprep.subr.mxu1 %v570_v1  ;;  %451 = vmatprep.mubr.msk.f32.mxu1 %vm571_vm0, %v570_v1  ;;  %v150_v9 = vld [vmem:[#allocation6 + $0xf8] sm:$0xff]  ;;  %v149_v11 = vld [vmem:[#allocation6 + $0xf0] sm:$0xff]  ;;  %v148_v12 = vld [vmem:[#allocation6 + $0xe8] sm:$0xff]  ;;  %s322_s1 = sshll.u32 %s572_s0, 4  ;;  %s323_s1 = int_to_ptr.vmem [resolvable:$true] %s322_s1 }
  0x1d   :  { %385 = vmatpush3.msra.mxu0 %v62_v4  ;;  %v58_v10 = vld [vmem:[#allocation6 + $0x58] sm:$0xff]  ;;  %420 = vmatpush3.msra.mxu1 %v150_v9  ;;  %v57_v13 = vld [vmem:[#allocation6 + $0x50] sm:$0xff]  ;;  %v147_v14 = vld [vmem:[#allocation6 + $0xe0] sm:$0xff]  ;;  %s540_s21 = scalar_lea.vmem %s323_s1, 128  ;;  %p545_p11 = scmp.lt.s32.totalorder %s323_s1, %s323_s1 }
  0x1e   :  { %vm40_vm1 = vcmp.eq.s32.totalorder %v39_v2, 127  ;;  %386 = vmatprep.subr.mxu0 %v570_v1  ;;  %421 = vmatprep.subr.mxu1 %v570_v1  ;;  %v56_v15 = vld [vmem:[#allocation6 + $0x48] sm:$0xff]  ;;  %v146_v16 = vld [vmem:[#allocation6 + $0xd8] sm:$0xff]  ;;  %v55_v17 = vld [vmem:[#allocation6 + $0x40] sm:$0xff]  ;;  %p541_p10 = scmp.ne.s32.totalorder %s323_s1, %s540_s21  ;;  %p546_p12 = scmp.lt.s32.totalorder %s540_s21, %s540_s21 }
  0x1f   :  { %v41_v3 = vsel %vm40_vm1, 1.0, %v570_v1  ;;  %387 = vmatpush3.msra.mxu0 %v61_v5  ;;  %422 = vmatpush3.msra.mxu1 %v149_v11  ;;  %v145_v18 = vld [vmem:[#allocation6 + $0xd0] sm:$0xff]  ;;  %v54_v19 = vld [vmem:[#allocation6 + $0x38] sm:$0xff]  ;;  %v144_v20 = vld [vmem:[#allocation6 + $0xc8] sm:$0xff] }
  0x20   :  { %42 = vst [vmem:[#allocation2] sm:$0xff] %v41_v3  ;;  %388 = vmatprep.subr.mxu0 %v570_v1  ;;  %423 = vmatprep.subr.mxu1 %v570_v1  ;;  %v53_v21 = vld [vmem:[#allocation6 + $0x30] sm:$0xff]  ;;  %v143_v22 = vld [vmem:[#allocation6 + $0xc0] sm:$0xff]  ;;  %v52_v23 = vld [vmem:[#allocation6 + $0x28] sm:$0xff]  ;;  %p547_p13 = por %p546_p12, %p545_p11 }
  0x21   :  { %389 = vmatpush3.msra.mxu0 %v60_v6  ;;  %45 = vst.msk [vmem:[#allocation2] sm:$0xff] %vm44_vm2, %v43_v8  ;;  %424 = vmatpush3.msra.mxu1 %v148_v12  ;;  %v142_v24 = vld [vmem:[#allocation6 + $0xb8] sm:$0xff]  ;;  %v51_v25 = vld [vmem:[#allocation6 + $0x20] sm:$0xff]  ;;  %v141_v26 = vld [vmem:[#allocation6 + $0xb0] sm:$0xff] }
  0x22   :  { %390 = vmatprep.subr.mxu0 %v570_v1  ;;  %425 = vmatprep.subr.mxu1 %v570_v1  ;;  %v50_v27 = vld [vmem:[#allocation6 + $0x18] sm:$0xff]  ;;  %v140_v28 = vld [vmem:[#allocation6 + $0xa8] sm:$0xff]  ;;  %v49_v29 = vld [vmem:[#allocation6 + $0x10] sm:$0xff]  ;;  %p548_p0 = pnand %p547_p13, %p541_p10 }
  0x23   :  { %391 = vmatpush3.msra.mxu0 %v59_v7  ;;  %426 = vmatpush3.msra.mxu1 %v147_v14  ;;  %v139_v30 = vld [vmem:[#allocation6 + $0xa0] sm:$0xff]  ;;  %v48_v31 = vld [vmem:[#allocation6 + $0x8] sm:$0xff]  ;;  %v138_v32 = vld [vmem:[#allocation6 + $0x98] sm:$0xff] }
  0x24   :  { %392 = vmatprep.subr.mxu0 %v570_v1  ;;  %427 = vmatprep.subr.mxu1 %v570_v1  ;;  %v47_v33 = vld [vmem:[#allocation6] sm:$0xff]  ;;  %v137_v35 = vld [vmem:[#allocation6 + $0x90] sm:$0xff]  ;;  %v136_v36 = vld [vmem:[#allocation6 + $0x88] sm:$0xff] }
  0x25   :  { %393 = vmatpush3.msra.mxu0 %v58_v10  ;;  %428 = vmatpush3.msra.mxu1 %v146_v16  ;;  %v135_v37 = vld [vmem:[#allocation6 + $0x80] sm:$0xff]  ;;  %v238_v38 = vld [vmem:[#allocation6 + $0x178] sm:$0xff]  ;;  %v237_v39 = vld [vmem:[#allocation6 + $0x170] sm:$0xff] }
  0x26   :  { %394 = vmatprep.subr.mxu0 %v570_v1  ;;  %429 = vmatprep.subr.mxu1 %v570_v1  ;;  %v236_v40 = vld [vmem:[#allocation6 + $0x168] sm:$0xff]  ;;  %v235_v41 = vld [vmem:[#allocation6 + $0x160] sm:$0xff]  ;;  %v234_v42 = vld [vmem:[#allocation6 + $0x158] sm:$0xff] }
  0x27   :  { %395 = vmatpush3.msra.mxu0 %v57_v13  ;;  %430 = vmatpush3.msra.mxu1 %v145_v18  ;;  %v233_v43 = vld [vmem:[#allocation6 + $0x150] sm:$0xff]  ;;  %v232_v44 = vld [vmem:[#allocation6 + $0x148] sm:$0xff]  ;;  %v231_v45 = vld [vmem:[#allocation6 + $0x140] sm:$0xff] }
  0x28   :  { %396 = vmatprep.subr.mxu0 %v570_v1  ;;  %431 = vmatprep.subr.mxu1 %v570_v1  ;;  %v46_v34 = vld [vmem:[#allocation2] sm:$0xff]  ;;  %v230_v46 = vld [vmem:[#allocation6 + $0x138] sm:$0xff]  ;;  %v228_v48 = vld [vmem:[#allocation6 + $0x128] sm:$0xff] }
  0x29   :  { %397 = vmatpush3.msra.mxu0 %v56_v15  ;;  %432 = vmatpush3.msra.mxu1 %v144_v20  ;;  %v229_v47 = vld [vmem:[#allocation6 + $0x130] sm:$0xff]  ;;  %v227_v49 = vld [vmem:[#allocation6 + $0x120] sm:$0xff]  ;;  %v226_v50 = vld [vmem:[#allocation6 + $0x118] sm:$0xff] }
  0x2a   :  { %398 = vmatprep.subr.mxu0 %v570_v1  ;;  %433 = vmatprep.subr.mxu1 %v570_v1  ;;  %v225_v51 = vld [vmem:[#allocation6 + $0x110] sm:$0xff]  ;;  %v224_v55 = vld [vmem:[#allocation6 + $0x108] sm:$0xff]  ;;  %v223_v56 = vld [vmem:[#allocation6 + $0x100] sm:$0xff] }
  0x2b   :  { %399 = vmatpush3.msra.mxu0 %v55_v17  ;;  %434 = vmatpush3.msra.mxu1 %v143_v22 }
  0x2c   :  { %400 = vmatprep.subr.mxu0 %v570_v1  ;;  %435 = vmatprep.subr.mxu1 %v570_v1 }
  0x2d   :  { %401 = vmatpush3.msra.mxu0 %v54_v19  ;;  %436 = vmatpush3.msra.mxu1 %v142_v24 }
  0x2e   :  { %402 = vmatprep.subr.mxu0 %v570_v1  ;;  %437 = vmatprep.subr.mxu1 %v570_v1 }
  0x2f   :  { %403 = vmatpush3.msra.mxu0 %v53_v21  ;;  %438 = vmatpush3.msra.mxu1 %v141_v26 }
  0x30   :  { %404 = vmatprep.subr.mxu0 %v570_v1  ;;  %439 = vmatprep.subr.mxu1 %v570_v1 }
  0x31   :  { %405 = vmatpush3.msra.mxu0 %v52_v23  ;;  %440 = vmatpush3.msra.mxu1 %v140_v28 }
  0x32   :  { %406 = vmatprep.subr.mxu0 %v570_v1  ;;  %441 = vmatprep.subr.mxu1 %v570_v1 }
  0x33   :  { %407 = vmatpush3.msra.mxu0 %v51_v25  ;;  %442 = vmatpush3.msra.mxu1 %v139_v30 }
  0x34   :  { %408 = vmatprep.subr.mxu0 %v570_v1  ;;  %443 = vmatprep.subr.mxu1 %v570_v1 }
  0x35   :  { %409 = vmatpush3.msra.mxu0 %v50_v27  ;;  %444 = vmatpush3.msra.mxu1 %v138_v32 }
  0x36   :  { %410 = vmatprep.subr.mxu0 %v570_v1  ;;  %445 = vmatprep.subr.mxu1 %v570_v1 }
  0x37   :  { %411 = vmatpush3.msra.mxu0 %v49_v29  ;;  %446 = vmatpush3.msra.mxu1 %v137_v35 }
  0x38   :  { %412 = vmatprep.subr.mxu0 %v570_v1  ;;  %447 = vmatprep.subr.mxu1 %v570_v1 }
  0x39   :  { %413 = vmatpush3.msra.mxu0 %v48_v31  ;;  %448 = vmatpush3.msra.mxu1 %v136_v36 }
  0x3a   :  { %414 = vmatprep.subr.mxu0 %v570_v1  ;;  %449 = vmatprep.subr.mxu1 %v570_v1 }
  0x3b   :  { %415 = vmatpush3.msra.mxu0 %v47_v33  ;;  %450 = vmatpush3.msra.mxu1 %v135_v37 }
  0x3c   :  { %417 = vmatmul.mubr.f32.vlgmr.msra.gmra.mxu0 %v46_v34  ;;  %454 = vmatprep.subr.mxu0 %v570_v1 }
  0x3d   :  { %486 = vmatprep.mubr.msk.f32.mxu0 %vm571_vm0, %v570_v1  ;;  %455 = vmatpush3.msra.mxu0 %v238_v38 }
  0x3e   :  { %456 = vmatprep.subr.mxu0 %v570_v1 }
  0x3f   :  { %457 = vmatpush3.msra.mxu0 %v237_v39 }
  0x40   :  { %458 = vmatprep.subr.mxu0 %v570_v1 }
  0x41   :  { %459 = vmatpush3.msra.mxu0 %v236_v40 }
  0x42   :  { %460 = vmatprep.subr.mxu0 %v570_v1 }
  0x43   :  { %461 = vmatpush3.msra.mxu0 %v235_v41 }
  0x44   :  { %462 = vmatprep.subr.mxu0 %v570_v1 }
  0x45   :  { %463 = vmatpush3.msra.mxu0 %v234_v42 }
  0x46   :  { %464 = vmatprep.subr.mxu0 %v570_v1 }
  0x47   :  { %465 = vmatpush3.msra.mxu0 %v233_v43 }
  0x48   :  { %466 = vmatprep.subr.mxu0 %v570_v1 }
  0x49   :  { %467 = vmatpush3.msra.mxu0 %v232_v44 }
  0x4a   :  { %468 = vmatprep.subr.mxu0 %v570_v1 }
  0x4b   :  { %469 = vmatpush3.msra.mxu0 %v231_v45 }
  0x4c   :  { %470 = vmatprep.subr.mxu0 %v570_v1 }
  0x4d   :  { %471 = vmatpush3.msra.mxu0 %v230_v46 }
  0x4e   :  { %472 = vmatprep.subr.mxu0 %v570_v1 }
  0x4f   :  { %473 = vmatpush3.msra.mxu0 %v229_v47 }
  0x50   :  { %474 = vmatprep.subr.mxu0 %v570_v1 }
  0x51   :  { %475 = vmatpush3.msra.mxu0 %v228_v48 }
  0x52   :  { %476 = vmatprep.subr.mxu0 %v570_v1 }
  0x53   :  { %477 = vmatpush3.msra.mxu0 %v227_v49 }
  0x54   :  { %478 = vmatprep.subr.mxu0 %v570_v1 }
  0x55   :  { %479 = vmatpush3.msra.mxu0 %v226_v50 }
  0x56   :  { %480 = vmatprep.subr.mxu0 %v570_v1 }
  0x57   :  { %481 = vmatpush3.msra.mxu0 %v225_v51 }
  0x58   :  { %482 = vmatprep.subr.mxu0 %v570_v1 }
  0x59   :  { %483 = vmatpush3.msra.mxu0 %v224_v55 }
  0x5a   :  { %484 = vmatprep.subr.mxu0 %v570_v1 }
  0x5b   :  { %485 = vmatpush3.msra.mxu0 %v223_v56 }
  0xfc   :  { %v129_v52 = vpop.f32.mrf.mxu0 }
  0xfd   :  { %v133_v53 = vmax.f32 %v129_v52, 0.0 }
  0xfe   :  { %v418_v54 = vpop.f32.mrf.mxu0 }
  0xff   :  { %452 = vmatmul.mubr.f32.vlgmr.msra.gmra.mxu1 %v133_v53 }
 0x1bf   :  { %v217_v57 = vpop.f32.mrf.mxu1 }
 0x1c0   :  { %v221_v58 = vmax.f32 %v217_v57, 0.0 }
 0x1c1   :  { %v453_v59 = vpop.f32.mrf.mxu1 }
 0x1c2   :  { %487 = vmatmul.mubr.f32.vlgmr.msra.gmra.mxu0 %v221_v58 }
 0x282   :  { %v305_v60 = vpop.f32.mrf.mxu0 }
 0x283   :  { %v332_v61 = vmul.f32 -1.442695, %v305_v60 }
 0x284   :  { %v488_v62 = vpop.f32.mrf.mxu0 }
 0x285   :  { %496 = vpow2.f32 %v332_v61 }
 0x292   :  { %v497_v63 = vpop.eup %496 }
 0x293   :  { %v312_v0 = vadd.f32 1.0, %v497_v63 }
 0x295   :  { %498 = vrcp.f32 %v312_v0 }
 0x2a2   :  { %v499_v2 = vpop.eup %498 }
 0x2a3   :  { %315 = vst [vmem:[#allocation8] sm:$0xff] %v499_v2 }
 0x2a4   :  { %551 = shalt.err (!%p548_p0)
}
 0x2a5   :  { %325 = dma.vmem_to_hbm [thread:$0]  %s323_s1, 128, %s654_s2, [#allocation5]  }
 0x2a6   :  { %564 = dma.done.wait [#allocation5], 128  }
 0x2a7   :  { %565 = vsyncadd [#allocation5], 4294967168 }
 0x2a8   :  { %329 = vsyncpa [#allocation4], 1 }
 0x2a9   :  { %330 = vsyncpa [#allocation7], 1 }
 0x2aa   :  { %331 = vsyncpa [#allocation5], 1 }

</bundles_post_ra>
